<compile_context>
chip_gen: v7x
topology: tpu7x:2x2x1
jax: 0.10.0
libtpu: 0.0.40
codegen_flags: <defaults>
</compile_context>

<pallas_src>
import functools
import math

import jax
import jax.numpy as jnp
from jax import lax
from jax.experimental import pallas as pl
from jax.experimental.pallas import tpu as pltpu


# ----------------------- hardware-derived budgets ---------------------------

def _vmem_budget_bytes():
    """Scoped-VMEM request derived from physical per-core capacity, leaving
    headroom for compiler scratch / double buffering (critical on v7x)."""
    cap = None
    try:
        cap = int(getattr(pltpu.get_tpu_info(), "vmem_capacity_bytes", 0)) or None
    except Exception:
        cap = None
    if cap is None:
        cap = 64 * 1024 * 1024          # conservative: fits every generation
    return int(min(cap * 3 // 4, 100 * 1024 * 1024))


_VMEM_BUDGET = _vmem_budget_bytes()
_BIG_VMEM = _VMEM_BUDGET >= 80 * 1024 * 1024      # v5e / v6e (128 MiB parts)

# linear-kernel tile targets (bigger on 128 MiB parts: weight re-streamed
# from HBM M/tm times, so larger tm directly cuts HBM traffic)
_TM, _TN, _TK = (512, 1024, 512) if _BIG_VMEM else (256, 512, 512)
_ATTN_T = 512 if _BIG_VMEM else 256               # flash q/kv tile target
_ATTN_LANES = 256 if _BIG_VMEM else 128           # merged head-group width


def _pick_tile(dim, target, aligns):
    """Largest tile <= target that divides `dim`, preferring larger (MXU-
    friendly) alignment; falls back to the full dim (always legal)."""
    if dim <= target:
        return dim
    for align in aligns:
        if align > target:
            continue
        t = (target // align) * align
        while t >= align:
            if dim % t == 0:
                return t
            t -= align
    # TODO(synk): pad awkward (prime) dims instead of using the full extent.
    return dim


def _heads_per_block(n_head, hd, target_lanes):
    """Largest head group dividing n_head whose merged width is lane-dense
    (multiple of 128) and <= target_lanes; else smallest legal group
    (ultimately all heads -> width == nx, a full-dim block)."""
    legal = [h for h in range(1, n_head + 1)
             if n_head % h == 0 and ((h * hd) % 128 == 0 or h == n_head)]
    within = [h for h in legal if h * hd <= target_lanes]
    return max(within) if within else min(legal)


# ----------------------------- Pallas kernels -------------------------------

def _linear_lora_kernel(x_ref, w_ref, u_ref, bT_ref, b_ref, o_ref, acc_ref, *,
                        scaling):
    # grid = (M/tm, N/tn, K/tk); K is the reduction ("arbitrary") axis.
    k = pl.program_id(2)

    @pl.when(k == 0)
    def _():
        acc_ref[...] = jnp.zeros_like(acc_ref)

    acc_ref[...] += jnp.dot(x_ref[...], w_ref[...],
                            preferred_element_type=jnp.float32)

    @pl.when(k == pl.num_programs(2) - 1)
    def _():
        # rank-r LoRA epilogue: (tm, Rp) @ (Rp, tn) — negligible MXU work.
        lora = jnp.dot(u_ref[...], bT_ref[...],
                       preferred_element_type=jnp.float32)
        o_ref[...] = (acc_ref[...] + b_ref[...] + scaling * lora
                      ).astype(o_ref.dtype)


def _linear_kernel(x_ref, w_ref, b_ref, o_ref, acc_ref):
    k = pl.program_id(2)

    @pl.when(k == 0)
    def _():
        acc_ref[...] = jnp.zeros_like(acc_ref)

    acc_ref[...] += jnp.dot(x_ref[...], w_ref[...],
                            preferred_element_type=jnp.float32)

    @pl.when(k == pl.num_programs(2) - 1)
    def _():
        o_ref[...] = (acc_ref[...] + b_ref[...]).astype(o_ref.dtype)


def _flash_attn_kernel(q_ref, k_ref, v_ref, o_ref, m_ref, l_ref, acc_ref, *,
                       hpb, hd, t):
    # q block: (1, t, hpb*hd)   k/v blocks: (1, t, hpb*hd)
    # scratch: m,l (hpb, t, 1) f32 ; acc (t, hpb*hd) f32 (lane-dense)
    qi = pl.program_id(2)
    ki = pl.program_id(3)

    @pl.when(ki == 0)
    def _():
        m_ref[...] = jnp.full_like(m_ref, -jnp.inf)
        l_ref[...] = jnp.zeros_like(l_ref)
        acc_ref[...] = jnp.zeros_like(acc_ref)

    # Causal block pruning (tq == tk == t): blocks with ki > qi are entirely
    # above the diagonal; their K/V DMA is elided by the clamped index_map,
    # and skipping compute here removes ~half of the QK^T / P@V MXU work.
    @pl.when(ki <= qi)
    def _():
        q = q_ref[0].astype(jnp.bfloat16)
        k = k_ref[0].astype(jnp.bfloat16)
        v = v_ref[0].astype(jnp.bfloat16)

        # in-kernel causal mask (no (T,T) HBM mask DMA)
        row = qi * t + lax.broadcasted_iota(jnp.int32, (t, t), 0)
        col = ki * t + lax.broadcasted_iota(jnp.int32, (t, t), 1)
        causal = col <= row

        for h in range(hpb):                       # hpb is small & static
            sl = slice(h * hd, (h + 1) * hd)
            s = lax.dot_general(q[:, sl], k[:, sl],
                                (((1,), (1,)), ((), ())),
                                preferred_element_type=jnp.float32)   # (t,t)
            s = jnp.where(causal, s, -1.0e10)
            m_prev = m_ref[h]                                         # (t,1)
            m_new = jnp.maximum(m_prev, jnp.max(s, axis=-1, keepdims=True))
            alpha = jnp.exp(m_prev - m_new)
            p = jnp.exp(s - m_new)
            l_ref[h] = alpha * l_ref[h] + jnp.sum(p, axis=-1, keepdims=True)
            pv = lax.dot_general(p.astype(jnp.bfloat16), v[:, sl],
                                 (((1,), (0,)), ((), ())),
                                 preferred_element_type=jnp.float32)  # (t,hd)
            acc_ref[:, sl] = alpha * acc_ref[:, sl] + pv
            m_ref[h] = m_new

    @pl.when(ki == pl.num_programs(3) - 1)
    def _():
        # normalize per head, merge in vregs, emit one wide lane-dense store
        parts = []
        for h in range(hpb):
            inv = pl.reciprocal(l_ref[h], approx=True)                # EUP
            parts.append(acc_ref[:, h * hd:(h + 1) * hd] * inv)
        merged = parts[0] if hpb == 1 else jnp.concatenate(parts, axis=-1)
        o_ref[0] = merged.astype(o_ref.dtype)


# ------------------------------- wrappers ------------------------------------

def linear_lora(x, w, u, bT, b, scaling):
    out_dtype = x.dtype
    M, K = x.shape
    N = w.shape[1]
    R = u.shape[1]
    tm = _pick_tile(M, _TM, (256, 128, 8))
    tn = _pick_tile(N, _TN, (512, 256, 128))
    tk = _pick_tile(K, _TK, (512, 256, 128))
    xb, wb = x.astype(jnp.bfloat16), w.astype(jnp.bfloat16)
    ub, bTb = u.astype(jnp.bfloat16), bT.astype(jnp.bfloat16)
    bias = b.reshape(1, N).astype(jnp.float32)
    return pl.pallas_call(
        functools.partial(_linear_lora_kernel, scaling=float(scaling)),
        out_shape=jax.ShapeDtypeStruct((M, N), out_dtype),
        grid_spec=pltpu.PrefetchScalarGridSpec(
            num_scalar_prefetch=0,
            grid=(M // tm, N // tn, K // tk),
            in_specs=[
                pl.BlockSpec((tm, tk), lambda i, j, k: (i, k)),
                pl.BlockSpec((tk, tn), lambda i, j, k: (k, j)),
                pl.BlockSpec((tm, R), lambda i, j, k: (i, 0)),
                pl.BlockSpec((R, tn), lambda i, j, k: (0, j)),
                pl.BlockSpec((1, tn), lambda i, j, k: (0, j)),
            ],
            out_specs=pl.BlockSpec((tm, tn), lambda i, j, k: (i, j)),
            scratch_shapes=[pltpu.VMEM((tm, tn), jnp.float32)],
        ),
        compiler_params=pltpu.CompilerParams(
            dimension_semantics=("parallel", "parallel", "arbitrary"),
            vmem_limit_bytes=_VMEM_BUDGET),
    )(xb, wb, ub, bTb, bias)


def linear(x, w, b):
    out_dtype = x.dtype
    M, K = x.shape
    N = w.shape[1]
    tm = _pick_tile(M, _TM, (256, 128, 8))
    tn = _pick_tile(N, _TN, (512, 256, 128))
    tk = _pick_tile(K, _TK, (512, 256, 128))
    xb, wb = x.astype(jnp.bfloat16), w.astype(jnp.bfloat16)
    bias = b.reshape(1, N).astype(jnp.float32)
    return pl.pallas_call(
        _linear_kernel,
        out_shape=jax.ShapeDtypeStruct((M, N), out_dtype),
        grid_spec=pltpu.PrefetchScalarGridSpec(
            num_scalar_prefetch=0,
            grid=(M // tm, N // tn, K // tk),
            in_specs=[
                pl.BlockSpec((tm, tk), lambda i, j, k: (i, k)),
                pl.BlockSpec((tk, tn), lambda i, j, k: (k, j)),
                pl.BlockSpec((1, tn), lambda i, j, k: (0, j)),
            ],
            out_specs=pl.BlockSpec((tm, tn), lambda i, j, k: (i, j)),
            scratch_shapes=[pltpu.VMEM((tm, tn), jnp.float32)],
        ),
        compiler_params=pltpu.CompilerParams(
            dimension_semantics=("parallel", "parallel", "arbitrary"),
            vmem_limit_bytes=_VMEM_BUDGET),
    )(xb, wb, bias)


def attention_core(qkv3, *, n_head, hd):
    """qkv3: (B, T, 3*nx) with 1/sqrt(hd) already folded into the Q section.
    Returns heads-merged context (B, T, nx)."""
    B, T, three_nx = qkv3.shape
    nx = n_head * hd
    hpb = _heads_per_block(n_head, hd, _ATTN_LANES)
    w = hpb * hd
    ngroups = n_head // hpb
    t = _pick_tile(T, _ATTN_T, (256, 128, 8))
    grid = (B, ngroups, T // t, T // t)

    if w % 128 == 0:
        # read q/k/v head-group column blocks straight out of the qkv slab —
        # no XLA split / split_heads transpose pass.
        q_arr = k_arr = v_arr = qkv3
        k_col, v_col = ngroups, 2 * ngroups
    else:
        # tiny models: merged width == nx (full-dim block); contiguous split
        # only, still no per-head transpose.
        q_arr, k_arr, v_arr = jnp.split(qkv3, 3, axis=2)
        k_col, v_col = 0, 0

    def q_map(b, g, qi, ki):
        return (b, qi, g)

    def k_map(b, g, qi, ki):          # clamp -> DMA of fully-masked blocks is elided
        return (b, jnp.minimum(ki, qi), k_col + g)

    def v_map(b, g, qi, ki):
        return (b, jnp.minimum(ki, qi), v_col + g)

    return pl.pallas_call(
        functools.partial(_flash_attn_kernel, hpb=hpb, hd=hd, t=t),
        out_shape=jax.ShapeDtypeStruct((B, T, nx), qkv3.dtype),
        grid_spec=pltpu.PrefetchScalarGridSpec(
            num_scalar_prefetch=0,
            grid=grid,
            in_specs=[
                pl.BlockSpec((1, t, w), q_map),
                pl.BlockSpec((1, t, w), k_map),
                pl.BlockSpec((1, t, w), v_map),
            ],
            out_specs=pl.BlockSpec((1, t, w), q_map),
            scratch_shapes=[
                pltpu.VMEM((hpb, t, 1), jnp.float32),     # running max
                pltpu.VMEM((hpb, t, 1), jnp.float32),     # running sum
                pltpu.VMEM((t, w), jnp.float32),          # output accumulator
            ],
        ),
        compiler_params=pltpu.CompilerParams(
            dimension_semantics=("parallel", "parallel", "parallel",
                                 "arbitrary"),
            vmem_limit_bytes=_VMEM_BUDGET),
    )(q_arr, k_arr, v_arr)


# --------------------------- full Attention forward --------------------------

def attention_forward(x, params, *, n_head, scale, scaling):
    """Replicates Attention.forward(x) with layer_past=None, len_past=None."""
    B, T, nx = x.shape
    hd = nx // n_head
    dtype = x.dtype
    x2 = x.reshape(B * T, nx)

    # LoRA, rank-r two-stage form (fan_in_fan_out=True, all lora blocks on,
    # lora_dropout = identity):
    #   lora_out[:, i*nx:(i+1)*nx] = (x @ A_i^T) @ B_i^T
    lora_A, lora_B = params["lora_A"], params["lora_B"]
    r = lora_A.shape[0] // 3
    R = 3 * r
    Rp = max(8, ((R + 7) // 8) * 8)                 # pad rank to sublane mult.
    u = jnp.zeros((B * T, Rp), dtype).at[:, :R].set(x2 @ lora_A.T)
    bT = jnp.zeros((Rp, 3 * nx), dtype)
    for i in range(3):
        bT = bT.at[i * r:(i + 1) * r, i * nx:(i + 1) * nx].set(
            lora_B[i * nx:(i + 1) * nx, :].T)

    w_attn, b_attn = params["w_attn"], params["b_attn"]
    if scale:
        # fold 1/sqrt(hd) into the Q columns of the projection (weights, bias
        # and LoRA-B) at trace time — no per-step in-kernel score scaling.
        inv = 1.0 / math.sqrt(hd)
        col_scale = jnp.concatenate(
            [jnp.full((nx,), inv, dtype), jnp.ones((2 * nx,), dtype)])
        w_attn = w_attn * col_scale
        b_attn = b_attn * col_scale
        bT = bT * col_scale

    # c_attn (MergedLinear, not merged)
    qkv = linear_lora(x2, w_attn, u, bT, b_attn, scaling)
    qkv3 = qkv.reshape(B, T, 3 * nx)

    # flash attention straight off the qkv slab; output is heads-merged
    a = attention_core(qkv3, n_head=n_head, hd=hd)          # (B, T, nx)

    # c_proj (Conv1D)
    out = linear(a.reshape(B * T, nx), params["w_proj"],
                 params["b_proj"]).reshape(B, T, nx)

    # present = stack((key.transpose(-2,-1), value)) -> (2, B, H, T, hd)
    # (module return contract; only k/v need the head-major relayout)
    key = qkv3[:, :, nx:2 * nx].reshape(B, T, n_head, hd).transpose(0, 2, 1, 3)
    val = qkv3[:, :, 2 * nx:].reshape(B, T, n_head, hd).transpose(0, 2, 1, 3)
    present = jnp.stack((key, val))
    return out, present


# ------------------------ plain-JAX reference (check) ------------------------

def _reference(x, params, *, n_head, scale, scaling):
    B, T, nx = x.shape
    hd = nx // n_head
    lora_A, lora_B = params["lora_A"], params["lora_B"]
    r = lora_A.shape[0] // 3
    delta_wT = jnp.concatenate(
        [(lora_B[i * nx:(i + 1) * nx] @ lora_A[i * r:(i + 1) * r]).T
         for i in range(3)], axis=1)
    x2 = x.reshape(B * T, nx)
    qkv = (x2 @ params["w_attn"] + params["b_attn"]
           + scaling * (x2 @ delta_wT)).reshape(B, T, 3 * nx)
    q, k, v = jnp.split(qkv, 3, axis=2)
    q = q.reshape(B, T, n_head, hd).transpose(0, 2, 1, 3)
    k = k.reshape(B, T, n_head, hd).transpose(0, 2, 1, 3)
    v = v.reshape(B, T, n_head, hd).transpose(0, 2, 1, 3)
    w = jnp.einsum("bhtd,bhsd->bhts", q, k)
    if scale:
        w = w / math.sqrt(hd)
    b = jnp.tril(jnp.ones((T, T), jnp.float32))
    w = w * b - 1.0e10 * (1.0 - b)
    w = jax.nn.softmax(w, axis=-1)
    a = jnp.einsum("bhts,bhsd->bhtd", w, v)
    a = a.transpose(0, 2, 1, 3).reshape(B, T, nx)
    out = a.reshape(B * T, nx) @ params["w_proj"] + params["b_proj"]
    return out.reshape(B, T, nx)


# ----------------------------------- main ------------------------------------

if __name__ == "__main__":
    # small shapes consistent with the module
    B, T, nx, n_head, r = 2, 8, 32, 4, 4
    lora_attn_alpha = 2            # config['lora_attn_alpha']; scaling == this
    use_scale = True
    hd = nx // n_head

    key = jax.random.PRNGKey(0)
    ks = jax.random.split(key, 7)
    x = jax.random.normal(ks[0], (B, T, nx), jnp.float32)

    # deterministic synthetic parameters (shapes from the module __init__):
    params = {
        # MergedLinear(nx, 3*nx, fan_in_fan_out=True) effective weight (nx,3nx)
        "w_attn": 0.02 * jax.random.normal(ks[1], (nx, 3 * nx), jnp.float32),
        "b_attn": 0.02 * jax.random.normal(ks[2], (3 * nx,), jnp.float32),
        # lora_A: (r*3, nx), lora_B: (3*nx, r)  (nonzero to exercise LoRA path)
        "lora_A": 0.1 * jax.random.normal(ks[3], (3 * r, nx), jnp.float32),
        "lora_B": 0.1 * jax.random.normal(ks[4], (3 * nx, r), jnp.float32),
        # Conv1D(nx, nx)
        "w_proj": 0.02 * jax.random.normal(ks[5], (nx, nx), jnp.float32),
        "b_proj": jnp.zeros((nx,), jnp.float32),
    }
    scaling = float(lora_attn_alpha)    # lora_alpha*r / r == lora_attn_alpha

    out, present = attention_forward(x, params, n_head=n_head,
                                     scale=use_scale, scaling=scaling)
    out = jax.block_until_ready(out)
    present = jax.block_until_ready(present)

    assert out.shape == (B, T, nx)
    assert present.shape == (2, B, n_head, T, hd)

    ref = _reference(x, params, n_head=n_head, scale=use_scale,
                     scaling=scaling)
    # tolerance loosened: bf16 MXU operands (f32 accumulation) + EUP
    # approximate reciprocal in the softmax normalizer.
    assert jnp.allclose(out, ref, atol=1e-2, rtol=1e-2), "mismatch vs reference"

    print("KERNEL_OK")
</pallas_src>

<mosaic_0001>
module attributes {stable_mosaic.version = 11 : i64} {
  func.func @_linear_lora_kernel(%arg0: i32, %arg1: i32, %arg2: i32, %arg3: memref<16x32xbf16, #tpu.memory_space<vmem>>, %arg4: memref<32x96xbf16, #tpu.memory_space<vmem>>, %arg5: memref<16x16xbf16, #tpu.memory_space<vmem>>, %arg6: memref<16x96xbf16, #tpu.memory_space<vmem>>, %arg7: memref<1x96xf32, #tpu.memory_space<vmem>>, %arg8: memref<16x96xf32, #tpu.memory_space<vmem>>, %arg9: memref<16x96xf32, #tpu.memory_space<vmem>>) attributes {dimension_semantics = [#tpu.dimension_semantics<parallel>, #tpu.dimension_semantics<parallel>, #tpu.dimension_semantics<arbitrary>], iteration_bounds = array<i64: 1, 1, 1>, scalar_prefetch = 0 : i64, scratch_operands = 1 : i64, tpu.core_type = #tpu.core_type<tc>, window_params = [{transform_indices = @transform_0, window_bounds = array<i64: 16, 32>}, {transform_indices = @transform_1, window_bounds = array<i64: 32, 96>}, {transform_indices = @transform_2, window_bounds = array<i64: 16, 16>}, {transform_indices = @transform_3, window_bounds = array<i64: 16, 96>}, {transform_indices = @transform_4, window_bounds = array<i64: 1, 96>}, {transform_indices = @transform_5, window_bounds = array<i64: 16, 96>}]} {
    %c0_i32 = arith.constant 0 : i32
    %0 = arith.cmpi eq, %arg2, %c0_i32 : i32
    %1 = arith.extui %0 : i1 to i32
    %c0_i32_0 = arith.constant 0 : i32
    %2 = arith.cmpi ne, %1, %c0_i32_0 : i32
    scf.if %2 {
      %cst_10 = arith.constant 0.000000e+00 : f32
      %12 = vector.broadcast %cst_10 : f32 to vector<16x96xf32>
      %c0_11 = arith.constant 0 : index
      %c0_12 = arith.constant 0 : index
      %13 = vector.load %arg9[%c0_11, %c0_12] : memref<16x96xf32, #tpu.memory_space<vmem>>, vector<16x96xf32>
      tpu.vector_store %arg9[%c0_11, %c0_12], %12 {strides = array<i32>} : memref<16x96xf32, #tpu.memory_space<vmem>>, vector<16x96xf32>,
    } else {
    }
    %c0 = arith.constant 0 : index
    %c0_1 = arith.constant 0 : index
    %3 = vector.load %arg9[%c0, %c0_1] : memref<16x96xf32, #tpu.memory_space<vmem>>, vector<16x96xf32>
    %c0_2 = arith.constant 0 : index
    %c0_3 = arith.constant 0 : index
    %4 = vector.load %arg3[%c0_2, %c0_3] : memref<16x32xbf16, #tpu.memory_space<vmem>>, vector<16x32xbf16>
    %c0_4 = arith.constant 0 : index
    %c0_5 = arith.constant 0 : index
    %5 = vector.load %arg4[%c0_4, %c0_5] : memref<32x96xbf16, #tpu.memory_space<vmem>>, vector<32x96xbf16>
    %cst = arith.constant dense<0.000000e+00> : vector<16x96xf32>
    %6 = tpu.matmul %4, %5, %cst {dimension_numbers = #tpu.dot_dimension_numbers<[1], [0], [0], [1], [0, 0, 1, 1], [], []>} : vector<16x32xbf16>, vector<32x96xbf16>, vector<16x96xf32> -> vector<16x96xf32>
    %7 = arith.addf %3, %6 : vector<16x96xf32>
    %c0_6 = arith.constant 0 : index
    %c0_7 = arith.constant 0 : index
    %8 = vector.load %arg9[%c0_6, %c0_7] : memref<16x96xf32, #tpu.memory_space<vmem>>, vector<16x96xf32>
    tpu.vector_store %arg9[%c0_6, %c0_7], %7 {strides = array<i32>} : memref<16x96xf32, #tpu.memory_space<vmem>>, vector<16x96xf32>,
    %c0_i32_8 = arith.constant 0 : i32
    %9 = arith.cmpi eq, %arg2, %c0_i32_8 : i32
    %10 = arith.extui %9 : i1 to i32
    %c0_i32_9 = arith.constant 0 : i32
    %11 = arith.cmpi ne, %10, %c0_i32_9 : i32
    scf.if %11 {
      %c0_10 = arith.constant 0 : index
      %c0_11 = arith.constant 0 : index
      %12 = vector.load %arg5[%c0_10, %c0_11] : memref<16x16xbf16, #tpu.memory_space<vmem>>, vector<16x16xbf16>
      %c0_12 = arith.constant 0 : index
      %c0_13 = arith.constant 0 : index
      %13 = vector.load %arg6[%c0_12, %c0_13] : memref<16x96xbf16, #tpu.memory_space<vmem>>, vector<16x96xbf16>
      %cst_14 = arith.constant dense<0.000000e+00> : vector<16x96xf32>
      %14 = tpu.matmul %12, %13, %cst_14 {dimension_numbers = #tpu.dot_dimension_numbers<[1], [0], [0], [1], [0, 0, 1, 1], [], []>} : vector<16x16xbf16>, vector<16x96xbf16>, vector<16x96xf32> -> vector<16x96xf32>
      %c0_15 = arith.constant 0 : index
      %c0_16 = arith.constant 0 : index
      %15 = vector.load %arg9[%c0_15, %c0_16] : memref<16x96xf32, #tpu.memory_space<vmem>>, vector<16x96xf32>
      %c0_17 = arith.constant 0 : index
      %c0_18 = arith.constant 0 : index
      %16 = vector.load %arg7[%c0_17, %c0_18] : memref<1x96xf32, #tpu.memory_space<vmem>>, vector<1x96xf32>
      %17 = vector.broadcast %16 : vector<1x96xf32> to vector<16x96xf32>
      %18 = arith.addf %15, %17 : vector<16x96xf32>
      %cst_19 = arith.constant 2.000000e+00 : f32
      %19 = vector.broadcast %cst_19 : f32 to vector<16x96xf32>
      %20 = arith.mulf %19, %14 : vector<16x96xf32>
      %21 = arith.addf %18, %20 : vector<16x96xf32>
      %c0_20 = arith.constant 0 : index
      %c0_21 = arith.constant 0 : index
      %22 = vector.load %arg8[%c0_20, %c0_21] : memref<16x96xf32, #tpu.memory_space<vmem>>, vector<16x96xf32>
      tpu.vector_store %arg8[%c0_20, %c0_21], %21 {strides = array<i32>} : memref<16x96xf32, #tpu.memory_space<vmem>>, vector<16x96xf32>,
    } else {
    }
    return
  }
  func.func @transform_0(%arg0: i32, %arg1: i32, %arg2: i32) -> (i32, i32) {
    %c0_i32 = arith.constant 0 : i32
    return %arg0, %arg2 : i32, i32
  }
  func.func @transform_1(%arg0: i32, %arg1: i32, %arg2: i32) -> (i32, i32) {
    %c0_i32 = arith.constant 0 : i32
    return %arg2, %arg1 : i32, i32
  }
  func.func @transform_2(%arg0: i32, %arg1: i32, %arg2: i32) -> (i32, i32) {
    %c0_i32 = arith.constant 0 : i32
    %c0_i32_0 = arith.constant 0 : i32
    return %arg0, %c0_i32 : i32, i32
  }
  func.func @transform_3(%arg0: i32, %arg1: i32, %arg2: i32) -> (i32, i32) {
    %c0_i32 = arith.constant 0 : i32
    %c0_i32_0 = arith.constant 0 : i32
    return %c0_i32, %arg1 : i32, i32
  }
  func.func @transform_4(%arg0: i32, %arg1: i32, %arg2: i32) -> (i32, i32) {
    %c0_i32 = arith.constant 0 : i32
    %c0_i32_0 = arith.constant 0 : i32
    return %c0_i32, %arg1 : i32, i32
  }
  func.func @transform_5(%arg0: i32, %arg1: i32, %arg2: i32) -> (i32, i32) {
    %c0_i32 = arith.constant 0 : i32
    return %arg0, %arg1 : i32, i32
  }
}

</mosaic_0001>

<bundles_post_ra>
// kernel: tpu_custom_call.1
= control target key start
LH: loop header
LB: loop body
LE: loop exit
PB: predicated region body
PF: predicated region fallthrough
CT: control target
= control target key end

     0   :  { %10 = vsyncpa [#allocation4], 0  ;;  %s495_s0 = inlined_call_operand.hbm [shape: bf16[16,32], index: 0, kind: input, shape index: {}]   ;;  %s496_s1 = inlined_call_operand.hbm [shape: bf16[32,96], index: 1, kind: input, shape index: {}]   ;;  %s497_s2 = inlined_call_operand.hbm [shape: bf16[16,16], index: 2, kind: input, shape index: {}]   ;;  %s498_s3 = inlined_call_operand.vmem [shape: bf16[16,96], index: 3, kind: input, shape index: {}]   ;;  %s499_s4 = inlined_call_operand.vmem [shape: f32[1,96], index: 4, kind: input, shape index: {}]   ;;  %s500_s5 = inlined_call_operand.hbm [shape: f32[16,96], index: 5, kind: output, shape index: {}]  }
   0x1   :  { %11 = vsyncpa [#allocation7], 0 }
   0x2   :  { %12 = vsyncpa [#allocation5], 0  ;;  %s379_s18 = smov [#allocation6]   ;;  %s380_s20 = smov [#allocation3]  }
   0x3   :  { %s30_s19 = sshll.u32 %s379_s18, 4  ;;  %s18_s21 = sshll.u32 %s380_s20, 4  ;;  %s31_s19 = int_to_ptr.vmem [resolvable:$true] %s30_s19  ;;  %s419_s21 = int_to_ptr.vmem [resolvable:$true] %s18_s21 }
   0x4   :  { %s285_s24 = scalar_lea.hbm %s496_s1, 256 }
   0x5   :  { %p286_p0 = scmp.ne.s32.totalorder %s496_s1, %s285_s24  ;;  %p289_p1 = scmp.lt.u32.totalorder %s285_s24, %s496_s1 }
   0x7   :  { %p291_p2 = pnand %p289_p1, %p286_p0 }
   0x9   :  { %294 = shalt.err (!%p291_p2)
}
   0xa   :  { %s295_s29 = scalar_lea.vmem %s31_s19, 256  ;;  %p300_p4 = scmp.lt.s32.totalorder %s31_s19, %s31_s19 }
   0xb   :  { %p296_p3 = scmp.ne.s32.totalorder %s31_s19, %s295_s29  ;;  %p301_p5 = scmp.lt.s32.totalorder %s295_s29, %s295_s29 }
   0xd   :  { %p302_p6 = por %p301_p5, %p300_p4 }
   0xf   :  { %p303_p7 = pnand %p302_p6, %p296_p3 }
  0x11   :  { %306 = shalt.err (!%p303_p7)
}
  0x12   :  { %s381_s30 = smov 64   ;;  %s382_s6 = smov 4  }
  0x13   :  { %36 = dma.hbm_to_vmem [thread:$0]  %s496_s1, 256, %s31_s19, [#allocation7], %s381_s30, %s381_s30, %s382_s6  }
  0x14   :  { %s307_s11 = scalar_lea.hbm %s495_s0, 128 }
  0x15   :  { %p308_p8 = scmp.ne.s32.totalorder %s495_s0, %s307_s11  ;;  %p311_p9 = scmp.lt.u32.totalorder %s307_s11, %s495_s0 }
  0x17   :  { %p313_p10 = pnand %p311_p9, %p308_p8 }
  0x19   :  { %316 = shalt.err (!%p313_p10)
}
  0x1a   :  { %s317_s16 = scalar_lea.vmem %s419_s21, 128  ;;  %p322_p12 = scmp.lt.s32.totalorder %s419_s21, %s419_s21 }
  0x1b   :  { %p318_p11 = scmp.ne.s32.totalorder %s419_s21, %s317_s16  ;;  %p323_p13 = scmp.lt.s32.totalorder %s317_s16, %s317_s16 }
  0x1d   :  { %p324_p0 = por %p323_p13, %p322_p12 }
  0x1f   :  { %p325_p1 = pnand %p324_p0, %p318_p11 }
  0x21   :  { %328 = shalt.err (!%p325_p1)
}
  0x22   :  { %24 = dma.hbm_to_vmem [thread:$0]  %s495_s0, 128, %s419_s21, [#allocation4], %s381_s30, %s381_s30, %s382_s6  }
  0x23   :  { %s383_s18 = smov [#allocation8]   ;;  %s329_s23 = scalar_lea.hbm %s497_s2, 128 }
  0x24   :  { %s42_s19 = sshll.u32 %s383_s18, 4  ;;  %p330_p2 = scmp.ne.s32.totalorder %s497_s2, %s329_s23  ;;  %s43_s19 = int_to_ptr.vmem [resolvable:$true] %s42_s19 }
  0x25   :  { %p333_p3 = scmp.lt.u32.totalorder %s329_s23, %s497_s2 }
  0x27   :  { %p335_p4 = pnand %p333_p3, %p330_p2 }
  0x29   :  { %338 = shalt.err (!%p335_p4)
}
  0x2a   :  { %s339_s28 = scalar_lea.vmem %s43_s19, 128  ;;  %p344_p6 = scmp.lt.s32.totalorder %s43_s19, %s43_s19 }
  0x2b   :  { %p340_p5 = scmp.ne.s32.totalorder %s43_s19, %s339_s28  ;;  %p345_p7 = scmp.lt.s32.totalorder %s339_s28, %s339_s28 }
  0x2d   :  { %p346_p8 = por %p345_p7, %p344_p6 }
  0x2f   :  { %p347_p9 = pnand %p346_p8, %p340_p5 }
  0x31   :  { %350 = shalt.err (!%p347_p9)
}
  0x32   :  { %48 = dma.hbm_to_vmem [thread:$0]  %s497_s2, 128, %s43_s19, [#allocation7], %s381_s30, %s381_s30, %s382_s6  }
  0x33   :  { %373 = dma.done.wait [#allocation4], 128  }
  0x34   :  { %374 = vsyncadd [#allocation4], 4294967168 }
  0x35   :  { %375 = dma.done.wait [#allocation7], 384  }
  0x36   :  { %376 = vsyncadd [#allocation7], 4294966912  ;;  %v384_v0 = vmov 0.0   ;;  %vm385_vm0 = vmmov 0   ;;  %vm67_vm1 = vcmask 785408   ;;  %v280_v1 = vld [vmem:[#allocation6] sm:$0xff]  }
  0x37   :  { %256 = vmatprep.subr.bf16.mxu0 %v384_v0  ;;  %260 = vmatprep.mubr.msk.bf16.mxu0 %vm385_vm0, %v384_v0  ;;  %68 = vst.msk [vmem:[#allocation2] sm:$0xff] %vm67_vm1, %v384_v0  ;;  %69 = vst.msk [vmem:[#allocation2 + $0x8] sm:$0xff] %vm67_vm1, %v384_v0  ;;  %v281_v2 = vld [vmem:[#allocation6 + $0x8] sm:$0xff]   ;;  %v284_v4 = vld [vmem:[#allocation8] sm:$0xff]   ;;  %vm163_vm2 = vcmask 130048   ;;  %vm95_vm3 = vcmask 261120  }
  0x38   :  { %264 = vmatprep.subr.bf16.mxu1 %v384_v0  ;;  %266 = vmatprep.mubr.msk.bf16.mxu1 %vm385_vm0, %v384_v0  ;;  %v283_v3 = vld [vmem:[%s498_s3] sm:$0xff]   ;;  %v282_v5 = vld [vmem:[#allocation3] sm:$0xff]   ;;  %s386_s6 = smov [#allocation9]  }
  0x39   :  { %257 = vmatpush3.bf16.msra.mxu0 %v280_v1  ;;  %265 = vmatpush3.bf16.msra.mxu1 %v283_v3  ;;  %v250_v18 = vld [vmem:[%s499_s4] ss:$0 sm:$0xff]  ;;  %s230_s7 = sshll.u32 %s386_s6, 4  ;;  %s231_s7 = int_to_ptr.vmem [resolvable:$true] %s230_s7 }
  0x3a   :  { %258 = vmatprep.subr.bf16.mxu0 %v384_v0  ;;  %s351_s8 = scalar_lea.vmem %s231_s7, 256  ;;  %p356_p11 = scmp.lt.s32.totalorder %s231_s7, %s231_s7 }
  0x3b   :  { %p352_p10 = scmp.ne.s32.totalorder %s231_s7, %s351_s8  ;;  %p357_p12 = scmp.lt.s32.totalorder %s351_s8, %s351_s8 }
  0x3c   :  { %267 = vmatmul.mubr.msk.bf16.vlgmr.msra.gmra.mrb[0].mxu1 %vm163_vm2, %v284_v4 }
  0x3d   :  { %259 = vmatpush3.bf16.msra.mxu0 %v281_v2  ;;  %p358_p13 = por %p357_p12, %p356_p11 }
  0x3e   :  { %v70_v6 = vld [vmem:[#allocation2] sm:$0xff]  ;;  %v71_v9 = vld [vmem:[#allocation2 + $0x8] sm:$0xff] }
  0x3f   :  { %p359_p0 = pnand %p358_p13, %p352_p10 }
  0x40   :  { %261 = vmatmul.mubr.msk.bf16.vlgmr.msra.gmra.mrb[0].mxu0 %vm95_vm3, %v282_v5 }
 0x10f   :  { %v201_v7 = vpop.f32.mrb[0].mxu1 }
 0x110   :  { %v268_v10 = vpop.f32.mrb[1].mxu1  ;;  %v219_v19 = vmul.f32 2.0, %v201_v7 }
 0x111   :  { %v204_v13 = vpop.f32.mrb[2].mxu1 }
 0x112   :  { %v269_v15 = vpop.f32.mrb[3].mxu1  ;;  %v220_v25 = vmul.f32 2.0, %v204_v13 }
 0x113   :  { %v133_v8 = vpop.f32.mrb[0].mxu0 }
 0x114   :  { %v140_v11 = vadd.f32 %v133_v8, %v70_v6  ;;  %v262_v12 = vpop.f32.mrb[1].mxu0 }
 0x115   :  { %v136_v14 = vpop.f32.mrb[2].mxu0 }
 0x116   :  { %143 = vst.msk [vmem:[#allocation2] sm:$0xff] %vm67_vm1, %v140_v11  ;;  %v141_v16 = vadd.f32 %v136_v14, %v71_v9  ;;  %v263_v17 = vpop.f32.mrb[3].mxu0 }
 0x118   :  { %144 = vst.msk [vmem:[#allocation2 + $0x8] sm:$0xff] %vm67_vm1, %v141_v16 }
 0x11d   :  { %v208_v20 = vld [vmem:[#allocation2] sm:$0xff] }
 0x11e   :  { %v217_v21 = vadd.f32 %v250_v18, %v208_v20 }
 0x11f   :  { %v209_v22 = vld [vmem:[#allocation2 + $0x8] sm:$0xff] }
 0x120   :  { %v221_v23 = vadd.f32 %v219_v19, %v217_v21  ;;  %v218_v24 = vadd.f32 %v250_v18, %v209_v22 }
 0x122   :  { %223 = vst.msk [vmem:[#allocation9] sm:$0xff] %vm67_vm1, %v221_v23  ;;  %v222_v26 = vadd.f32 %v220_v25, %v218_v24 }
 0x124   :  { %224 = vst.msk [vmem:[#allocation9 + $0x8] sm:$0xff] %vm67_vm1, %v222_v26 }
 0x125   :  { %362 = shalt.err (!%p359_p0)
}
 0x126   :  { %s363_s10 = scalar_lea.hbm %s500_s5, 256 }
 0x127   :  { %p364_p1 = scmp.ne.s32.totalorder %s500_s5, %s363_s10  ;;  %p367_p2 = scmp.lt.u32.totalorder %s363_s10, %s500_s5 }
 0x129   :  { %p369_p3 = pnand %p367_p2, %p364_p1 }
 0x12b   :  { %372 = shalt.err (!%p369_p3)
}
 0x12c   :  { %s387_s15 = smov 128   ;;  %s388_s16 = smov 8  }
 0x12d   :  { %236 = dma.vmem_to_hbm [thread:$0]  %s231_s7, 256, %s500_s5, [#allocation5], %s387_s15, %s387_s15, %s388_s16  }
 0x12e   :  { %377 = dma.done.wait [#allocation5], 256  }
 0x12f   :  { %378 = vsyncadd [#allocation5], 4294967040 }
 0x130   :  { %240 = vsyncpa [#allocation4], 1 }
 0x131   :  { %241 = vsyncpa [#allocation7], 1 }
 0x132   :  { %242 = vsyncpa [#allocation5], 1 }

</bundles_post_ra>
